<compile_context>
chip_gen: v5e
topology: v5e:2x2
jax: 0.10.0
libtpu: 0.0.40
codegen_flags: <defaults>
</compile_context>

<pallas_src>
import collections
import functools

import jax
import jax.numpy as jnp
from jax.experimental import pallas as pl
from jax.experimental.pallas import tpu as pltpu

PolicyForwardOutputs = collections.namedtuple(
    "PolicyForwardOutputs",
    ["obs", "actions", "values", "action_logits", "action_masks"],
)
PolicyEvaluateOutputs = collections.namedtuple(
    "PolicyEvaluateOutputs", ["values", "action_logits"]
)


def _round_up(x, m):
    return (x + m - 1) // m * m


# ----------------------------- Pallas kernel ---------------------------------


def _policy_fused_kernel(x_ref, w1_ref, b1_ref, wh_ref, bh_ref,
                         out_ref, act_ref,
                         h_sc, m_sc, idx_sc, *, vocab, tn):
    """One (row-tile i, vocab-tile j) step of the fused actor-critic policy.

    x_ref:   (TM, H)    embedded observations (compute dtype, e.g. bf16)
    w1_ref:  (H,  H)    backbone weight
    b1_ref:  (1,  H)    backbone bias (f32)
    wh_ref:  (H,  TN)   fused [actor | critic | pad] head weight tile
    bh_ref:  (1,  TN)   fused head bias tile (f32)
    out_ref: (TM, TN)   fused output slab (logits cols < V, value col V)
    act_ref: (TM, 1)    greedy actions (int32), written on the last vocab tile
    h_sc:    (TM, H)    backbone activations, resident across vocab tiles
    m_sc:    (TM, 1)    running max logit
    idx_sc:  (TM, 1)    running argmax index
    """
    j = pl.program_id(1)
    nt = pl.num_programs(1)

    # Backbone runs once per row tile (first vocab tile); result stays in VMEM.
    @pl.when(j == 0)
    def _():
        h = jnp.dot(x_ref[...], w1_ref[...], preferred_element_type=jnp.float32)
        h = jnp.tanh(h + b1_ref[...])
        h_sc[...] = h.astype(h_sc.dtype)
        m_sc[...] = jnp.full(m_sc.shape, -jnp.inf, dtype=m_sc.dtype)
        idx_sc[...] = jnp.zeros(idx_sc.shape, dtype=idx_sc.dtype)

    # Fused actor + critic head matmul for this vocab tile (single MXU pass).
    y = (jnp.dot(h_sc[...], wh_ref[...], preferred_element_type=jnp.float32)
         + bh_ref[...])
    out_ref[...] = y

    # Running greedy argmax over the real vocab columns only.
    col = j * tn + jax.lax.broadcasted_iota(jnp.int32, y.shape, 1)
    masked = jnp.where(col < vocab, y, -jnp.inf)
    tile_max = jnp.max(masked, axis=-1, keepdims=True)
    sentinel = jnp.int32(2 ** 30)
    tile_idx = jnp.min(jnp.where(masked == tile_max, col, sentinel),
                       axis=-1, keepdims=True)
    better = tile_max > m_sc[...]            # strict > keeps first-occurrence tie-break
    idx_sc[...] = jnp.where(better, tile_idx, idx_sc[...])
    m_sc[...] = jnp.where(better, tile_max, m_sc[...])

    @pl.when(j == nt - 1)
    def _():
        act_ref[...] = idx_sc[...]


def _run_policy_fused(x2d, w1, b1, wh, bh, *, vocab, tm, tn):
    """x2d: (rows, H) -> (fused (rows, F) f32, actions (rows, 1) i32)."""
    rows, H = x2d.shape
    fused_cols = wh.shape[1]
    assert rows % tm == 0 and fused_cols % tn == 0

    grid = (rows // tm, fused_cols // tn)
    itemsize = jnp.dtype(x2d.dtype).itemsize

    # Explicit VMEM budget (double-buffered specs + scratch) so the same tiling
    # stays portable to v7x's 64 MiB VMEM.
    per_step = (tm * H * itemsize + H * H * itemsize + H * 4
                + H * tn * itemsize + tn * 4
                + tm * tn * 4 + tm * 4)
    scratch_bytes = tm * H * itemsize + 2 * tm * 4
    vmem_limit = int(min(max(4 * per_step + scratch_bytes, 16 * 2 ** 20),
                         64 * 2 ** 20))

    flops = 2 * rows * H * H + 2 * rows * H * fused_cols
    bytes_accessed = (x2d.size * itemsize + w1.size * itemsize + b1.size * 4
                      + (rows // tm) * (wh.size * itemsize + bh.size * 4)
                      + rows * fused_cols * 4 + rows * 4)

    kernel = pl.pallas_call(
        functools.partial(_policy_fused_kernel, vocab=vocab, tn=tn),
        out_shape=(
            jax.ShapeDtypeStruct((rows, fused_cols), jnp.float32),
            jax.ShapeDtypeStruct((rows, 1), jnp.int32),
        ),
        grid_spec=pltpu.PrefetchScalarGridSpec(
            num_scalar_prefetch=0,
            grid=grid,
            in_specs=[
                pl.BlockSpec((tm, H), lambda i, j: (i, 0)),   # activations tile
                pl.BlockSpec((H, H), lambda i, j: (0, 0)),    # backbone W (resident)
                pl.BlockSpec((1, H), lambda i, j: (0, 0)),    # backbone b (resident)
                pl.BlockSpec((H, tn), lambda i, j: (0, j)),   # fused head W tile
                pl.BlockSpec((1, tn), lambda i, j: (0, j)),   # fused head b tile
            ],
            out_specs=[
                pl.BlockSpec((tm, tn), lambda i, j: (i, j)),  # logits|value slab
                pl.BlockSpec((tm, 1), lambda i, j: (i, 0)),   # greedy actions
            ],
            scratch_shapes=[
                pltpu.VMEM((tm, H), x2d.dtype),     # resident backbone acts
                pltpu.VMEM((tm, 1), jnp.float32),   # running max
                pltpu.VMEM((tm, 1), jnp.int32),     # running argmax
            ],
        ),
        compiler_params=pltpu.CompilerParams(
            dimension_semantics=("parallel", "arbitrary"),
            vmem_limit_bytes=vmem_limit,
        ),
        cost_estimate=pl.CostEstimate(
            flops=flops, transcendentals=rows * H, bytes_accessed=bytes_accessed),
    )
    return kernel(x2d, w1, b1, wh, bh)


# ------------------------------ Policy module --------------------------------


class PolicyForCausalLM:
    """Concrete actor-critic policy; heavy math runs in the Pallas kernel."""

    def __init__(self, vocab_size=128, hidden=32, row_tile=256, col_tile=1024,
                 compute_dtype=jnp.bfloat16, key=None):
        self.vocab_size = vocab_size
        self.hidden = hidden
        self.row_tile = max(8, _round_up(row_tile, 8))
        # Lane-dense vocab tile (multiple of 128), clamped to the fused width.
        self.col_tile = min(max(128, _round_up(col_tile, 128)),
                            _round_up(vocab_size + 1, 128))
        self.fused_cols = _round_up(vocab_size + 1, self.col_tile)
        self.compute_dtype = compute_dtype
        if key is None:
            key = jax.random.PRNGKey(0)
        self.init_weights(key)

    def init_weights(self, key):
        k_emb, k_w1, k_w2, k_wv = jax.random.split(key, 4)
        V, H, F = self.vocab_size, self.hidden, self.fused_cols
        cd = self.compute_dtype
        # Embedding stored in the compute dtype: halves the HBM gather traffic.
        self.embed = (jax.random.normal(k_emb, (V, H), jnp.float32)
                      * 0.02).astype(cd)
        self.w1 = (jax.random.normal(k_w1, (H, H), jnp.float32)
                   * (1.0 / H ** 0.5)).astype(cd)
        self.b1 = jnp.zeros((1, H), jnp.float32)
        w2 = jax.random.normal(k_w2, (H, V), jnp.float32) * (1.0 / H ** 0.5)
        wv = jax.random.normal(k_wv, (H, 1), jnp.float32) * (1.0 / H ** 0.5)
        # Actor (V cols) + critic (1 col) fused into one lane-dense head,
        # zero-padded up to a multiple of the vocab tile. Biases fused too.
        self.wh = jnp.concatenate(
            [w2, wv, jnp.zeros((H, F - V - 1), jnp.float32)], axis=1).astype(cd)
        self.bh = jnp.zeros((1, F), jnp.float32)

    @functools.partial(jax.jit, static_argnums=0)
    def _heads(self, obs):
        B, S = obs.shape
        H, V = self.hidden, self.vocab_size
        rows = B * S
        # TODO(synk): fold this embedding gather into the kernel via
        # scalar-prefetched token ids to skip one HBM round trip.
        x2d = self.embed[obs].reshape(rows, H).astype(self.compute_dtype)

        # Pad rows to the row tile (clamped for tiny inputs) instead of asserting.
        tm = min(self.row_tile, _round_up(rows, 8))
        rows_p = _round_up(rows, tm)
        if rows_p != rows:
            x2d = jnp.pad(x2d, ((0, rows_p - rows), (0, 0)))

        fused, act = _run_policy_fused(
            x2d, self.w1, self.b1, self.wh, self.bh,
            vocab=V, tm=tm, tn=self.col_tile)

        logits = fused[:rows, :V].reshape(B, S, V)
        values = fused[:rows, V].reshape(B, S)
        actions = act[:rows, 0].reshape(B, S).astype(jnp.int32)
        return logits, values, actions

    def forward(self, obs):
        logits, values, actions = self._heads(obs)
        masks = jnp.ones(obs.shape, jnp.float32)
        return PolicyForwardOutputs(
            obs=obs, actions=actions, values=values,
            action_logits=logits, action_masks=masks,
        )

    def evaluate_actions(self, obs, actions):
        logits, values, _ = self._heads(obs)
        return PolicyEvaluateOutputs(values=values, action_logits=logits)

    def predict_values(self, obs):
        return self._heads(obs)[1]

    def predict_actions(self, obs):
        return self._heads(obs)[2]


# ---------------------------------- main --------------------------------------

if __name__ == "__main__":
    key = jax.random.PRNGKey(0)
    B, S, V, H = 2, 8, 128, 32
    policy = PolicyForCausalLM(vocab_size=V, hidden=H,
                               key=jax.random.PRNGKey(0))
    obs = jax.random.randint(key, (B, S), 0, V, dtype=jnp.int32)

    out = policy.forward(obs)
    jax.block_until_ready(out.action_logits)
    jax.block_until_ready(out.values)
    jax.block_until_ready(out.actions)

    # Pure-JAX fp32 reference using the same (bf16-rounded) weights/activations.
    cd = policy.compute_dtype
    x_ref = policy.embed[obs].reshape(B * S, H).astype(cd).astype(jnp.float32)
    w1_f = policy.w1.astype(jnp.float32)
    wh_f = policy.wh.astype(jnp.float32)
    h_ref = jnp.tanh(x_ref @ w1_f + policy.b1)
    h_ref = h_ref.astype(cd).astype(jnp.float32)
    fused_ref = h_ref @ wh_f + policy.bh
    logits_ref = fused_ref[:, :V].reshape(B, S, V)
    values_ref = fused_ref[:, V].reshape(B, S)

    assert jnp.allclose(out.action_logits, logits_ref, atol=5e-3, rtol=5e-2), (
        float(jnp.max(jnp.abs(out.action_logits - logits_ref))))
    assert jnp.allclose(out.values, values_ref, atol=5e-3, rtol=5e-2), (
        float(jnp.max(jnp.abs(out.values - values_ref))))
    # In-kernel greedy argmax must agree with argmax over the kernel's logits.
    assert jnp.array_equal(
        out.actions, jnp.argmax(out.action_logits, axis=-1).astype(jnp.int32))
    assert out.actions.shape == (B, S)
    assert out.action_masks.shape == (B, S)

    print("KERNEL_OK")
</pallas_src>

<mosaic_0001>
module attributes {stable_mosaic.version = 11 : i64} {
  func.func @_policy_fused_kernel(%arg0: i32, %arg1: i32, %arg2: memref<16x32xbf16, #tpu.memory_space<vmem>>, %arg3: memref<32x32xbf16, #tpu.memory_space<vmem>>, %arg4: memref<1x32xf32, #tpu.memory_space<vmem>>, %arg5: memref<32x256xbf16, #tpu.memory_space<vmem>>, %arg6: memref<1x256xf32, #tpu.memory_space<vmem>>, %arg7: memref<16x256xf32, #tpu.memory_space<vmem>>, %arg8: memref<16x1xi32, #tpu.memory_space<vmem>>, %arg9: memref<16x32xbf16, #tpu.memory_space<vmem>>, %arg10: memref<16x1xf32, #tpu.memory_space<vmem>>, %arg11: memref<16x1xi32, #tpu.memory_space<vmem>>) attributes {dimension_semantics = [#tpu.dimension_semantics<parallel>, #tpu.dimension_semantics<arbitrary>], iteration_bounds = array<i64: 1, 1>, scalar_prefetch = 0 : i64, scratch_operands = 3 : i64, tpu.core_type = #tpu.core_type<tc>, window_params = [{transform_indices = @transform_0, window_bounds = array<i64: 16, 32>}, {pipeline_mode = #tpu.pipeline_mode<synchronous>, transform_indices = @transform_1, window_bounds = array<i64: 32, 32>}, {pipeline_mode = #tpu.pipeline_mode<synchronous>, transform_indices = @transform_2, window_bounds = array<i64: 1, 32>}, {transform_indices = @transform_3, window_bounds = array<i64: 32, 256>}, {transform_indices = @transform_4, window_bounds = array<i64: 1, 256>}, {transform_indices = @transform_5, window_bounds = array<i64: 16, 256>}, {transform_indices = @transform_6, window_bounds = array<i64: 16, 1>}]} {
    %c0_i32 = arith.constant 0 : i32
    %0 = arith.cmpi eq, %arg1, %c0_i32 : i32
    %1 = arith.extui %0 : i1 to i32
    %c0_i32_0 = arith.constant 0 : i32
    %2 = arith.cmpi ne, %1, %c0_i32_0 : i32
    scf.if %2 {
      %c0_23 = arith.constant 0 : index
      %c0_24 = arith.constant 0 : index
      %37 = vector.load %arg2[%c0_23, %c0_24] : memref<16x32xbf16, #tpu.memory_space<vmem>>, vector<16x32xbf16>
      %c0_25 = arith.constant 0 : index
      %c0_26 = arith.constant 0 : index
      %38 = vector.load %arg3[%c0_25, %c0_26] : memref<32x32xbf16, #tpu.memory_space<vmem>>, vector<32x32xbf16>
      %cst_27 = arith.constant dense<0.000000e+00> : vector<16x32xf32>
      %39 = tpu.matmul %37, %38, %cst_27 {dimension_numbers = #tpu.dot_dimension_numbers<[1], [0], [0], [1], [0, 0, 1, 1], [], []>} : vector<16x32xbf16>, vector<32x32xbf16>, vector<16x32xf32> -> vector<16x32xf32>
      %c0_28 = arith.constant 0 : index
      %c0_29 = arith.constant 0 : index
      %40 = vector.load %arg4[%c0_28, %c0_29] : memref<1x32xf32, #tpu.memory_space<vmem>>, vector<1x32xf32>
      %41 = vector.broadcast %40 : vector<1x32xf32> to vector<16x32xf32>
      %42 = arith.addf %39, %41 : vector<16x32xf32>
      %43 = math.tanh %42 : vector<16x32xf32>
      %44 = arith.truncf %43 : vector<16x32xf32> to vector<16x32xbf16>
      %c0_30 = arith.constant 0 : index
      %c0_31 = arith.constant 0 : index
      %45 = vector.load %arg9[%c0_30, %c0_31] : memref<16x32xbf16, #tpu.memory_space<vmem>>, vector<16x32xbf16>
      tpu.vector_store %arg9[%c0_30, %c0_31], %44 {strides = array<i32>} : memref<16x32xbf16, #tpu.memory_space<vmem>>, vector<16x32xbf16>,
      %cst_32 = arith.constant 0xFF800000 : f32
      %46 = vector.broadcast %cst_32 : f32 to vector<16x1xf32>
      %c0_33 = arith.constant 0 : index
      %c0_34 = arith.constant 0 : index
      %47 = vector.load %arg10[%c0_33, %c0_34] : memref<16x1xf32, #tpu.memory_space<vmem>>, vector<16x1xf32>
      tpu.vector_store %arg10[%c0_33, %c0_34], %46 {strides = array<i32>} : memref<16x1xf32, #tpu.memory_space<vmem>>, vector<16x1xf32>,
      %c0_i32_35 = arith.constant 0 : i32
      %48 = vector.broadcast %c0_i32_35 : i32 to vector<16x1xi32>
      %c0_36 = arith.constant 0 : index
      %c0_37 = arith.constant 0 : index
      %49 = vector.load %arg11[%c0_36, %c0_37] : memref<16x1xi32, #tpu.memory_space<vmem>>, vector<16x1xi32>
      tpu.vector_store %arg11[%c0_36, %c0_37], %48 {strides = array<i32>} : memref<16x1xi32, #tpu.memory_space<vmem>>, vector<16x1xi32>,
    } else {
    }
    %c0 = arith.constant 0 : index
    %c0_1 = arith.constant 0 : index
    %3 = vector.load %arg9[%c0, %c0_1] : memref<16x32xbf16, #tpu.memory_space<vmem>>, vector<16x32xbf16>
    %c0_2 = arith.constant 0 : index
    %c0_3 = arith.constant 0 : index
    %4 = vector.load %arg5[%c0_2, %c0_3] : memref<32x256xbf16, #tpu.memory_space<vmem>>, vector<32x256xbf16>
    %cst = arith.constant dense<0.000000e+00> : vector<16x256xf32>
    %5 = tpu.matmul %3, %4, %cst {dimension_numbers = #tpu.dot_dimension_numbers<[1], [0], [0], [1], [0, 0, 1, 1], [], []>} : vector<16x32xbf16>, vector<32x256xbf16>, vector<16x256xf32> -> vector<16x256xf32>
    %c0_4 = arith.constant 0 : index
    %c0_5 = arith.constant 0 : index
    %6 = vector.load %arg6[%c0_4, %c0_5] : memref<1x256xf32, #tpu.memory_space<vmem>>, vector<1x256xf32>
    %7 = vector.broadcast %6 : vector<1x256xf32> to vector<16x256xf32>
    %8 = arith.addf %5, %7 : vector<16x256xf32>
    %c0_6 = arith.constant 0 : index
    %c0_7 = arith.constant 0 : index
    %9 = vector.load %arg7[%c0_6, %c0_7] : memref<16x256xf32, #tpu.memory_space<vmem>>, vector<16x256xf32>
    tpu.vector_store %arg7[%c0_6, %c0_7], %8 {strides = array<i32>} : memref<16x256xf32, #tpu.memory_space<vmem>>, vector<16x256xf32>,
    %c256_i32 = arith.constant 256 : i32
    %10 = arith.muli %arg1, %c256_i32 : i32
    %11 = tpu.iota {dimensions = array<i32: 1>} : vector<16x256xi32>
    %12 = vector.broadcast %10 : i32 to vector<16x256xi32>
    %13 = arith.addi %12, %11 : vector<16x256xi32>
    %c128_i32 = arith.constant 128 : i32
    %14 = vector.broadcast %c128_i32 : i32 to vector<16x256xi32>
    %15 = arith.cmpi slt, %13, %14 : vector<16x256xi32>
    %cst_8 = arith.constant 0xFF800000 : f32
    %16 = vector.broadcast %cst_8 : f32 to vector<16x256xf32>
    %17 = arith.select %15, %8, %16 : vector<16x256xi1>, vector<16x256xf32>
    %cst_9 = arith.constant dense<0xFF800000> : vector<16xf32>
    %18 = vector.multi_reduction <maximumf>, %17, %cst_9 [1] : vector<16x256xf32> to vector<16xf32>
    %19 = vector.shape_cast %18 : vector<16xf32> to vector<16x1xf32>
    %20 = vector.broadcast %19 : vector<16x1xf32> to vector<16x256xf32>
    %21 = arith.cmpf oeq, %17, %20 : vector<16x256xf32>
    %c1073741824_i32 = arith.constant 1073741824 : i32
    %22 = vector.broadcast %c1073741824_i32 : i32 to vector<16x256xi32>
    %23 = arith.select %21, %13, %22 : vector<16x256xi1>, vector<16x256xi32>
    %cst_10 = arith.constant dense<2147483647> : vector<16xi32>
    %24 = vector.multi_reduction <minsi>, %23, %cst_10 [1] : vector<16x256xi32> to vector<16xi32>
    %25 = vector.shape_cast %24 : vector<16xi32> to vector<16x1xi32>
    %c0_11 = arith.constant 0 : index
    %c0_12 = arith.constant 0 : index
    %26 = vector.load %arg10[%c0_11, %c0_12] : memref<16x1xf32, #tpu.memory_space<vmem>>, vector<16x1xf32>
    %27 = arith.cmpf ogt, %19, %26 : vector<16x1xf32>
    %c0_13 = arith.constant 0 : index
    %c0_14 = arith.constant 0 : index
    %28 = vector.load %arg11[%c0_13, %c0_14] : memref<16x1xi32, #tpu.memory_space<vmem>>, vector<16x1xi32>
    %29 = arith.select %27, %25, %28 : vector<16x1xi1>, vector<16x1xi32>
    %c0_15 = arith.constant 0 : index
    %c0_16 = arith.constant 0 : index
    %30 = vector.load %arg11[%c0_15, %c0_16] : memref<16x1xi32, #tpu.memory_space<vmem>>, vector<16x1xi32>
    tpu.vector_store %arg11[%c0_15, %c0_16], %29 {strides = array<i32>} : memref<16x1xi32, #tpu.memory_space<vmem>>, vector<16x1xi32>,
    %c0_17 = arith.constant 0 : index
    %c0_18 = arith.constant 0 : index
    %31 = vector.load %arg10[%c0_17, %c0_18] : memref<16x1xf32, #tpu.memory_space<vmem>>, vector<16x1xf32>
    %32 = arith.select %27, %19, %31 : vector<16x1xi1>, vector<16x1xf32>
    %c0_19 = arith.constant 0 : index
    %c0_20 = arith.constant 0 : index
    %33 = vector.load %arg10[%c0_19, %c0_20] : memref<16x1xf32, #tpu.memory_space<vmem>>, vector<16x1xf32>
    tpu.vector_store %arg10[%c0_19, %c0_20], %32 {strides = array<i32>} : memref<16x1xf32, #tpu.memory_space<vmem>>, vector<16x1xf32>,
    %c0_i32_21 = arith.constant 0 : i32
    %34 = arith.cmpi eq, %arg1, %c0_i32_21 : i32
    %35 = arith.extui %34 : i1 to i32
    %c0_i32_22 = arith.constant 0 : i32
    %36 = arith.cmpi ne, %35, %c0_i32_22 : i32
    scf.if %36 {
      %c0_23 = arith.constant 0 : index
      %c0_24 = arith.constant 0 : index
      %37 = vector.load %arg11[%c0_23, %c0_24] : memref<16x1xi32, #tpu.memory_space<vmem>>, vector<16x1xi32>
      %c0_25 = arith.constant 0 : index
      %c0_26 = arith.constant 0 : index
      %38 = vector.load %arg8[%c0_25, %c0_26] : memref<16x1xi32, #tpu.memory_space<vmem>>, vector<16x1xi32>
      tpu.vector_store %arg8[%c0_25, %c0_26], %37 {strides = array<i32>} : memref<16x1xi32, #tpu.memory_space<vmem>>, vector<16x1xi32>,
    } else {
    }
    return
  }
  func.func @transform_0(%arg0: i32, %arg1: i32) -> (i32, i32) {
    %c0_i32 = arith.constant 0 : i32
    %c0_i32_0 = arith.constant 0 : i32
    return %arg0, %c0_i32 : i32, i32
  }
  func.func @transform_1(%arg0: i32, %arg1: i32) -> (i32, i32) {
    %c0_i32 = arith.constant 0 : i32
    %c0_i32_0 = arith.constant 0 : i32
    %c0_i32_1 = arith.constant 0 : i32
    return %c0_i32, %c0_i32_0 : i32, i32
  }
  func.func @transform_2(%arg0: i32, %arg1: i32) -> (i32, i32) {
    %c0_i32 = arith.constant 0 : i32
    %c0_i32_0 = arith.constant 0 : i32
    %c0_i32_1 = arith.constant 0 : i32
    return %c0_i32, %c0_i32_0 : i32, i32
  }
  func.func @transform_3(%arg0: i32, %arg1: i32) -> (i32, i32) {
    %c0_i32 = arith.constant 0 : i32
    %c0_i32_0 = arith.constant 0 : i32
    return %c0_i32, %arg1 : i32, i32
  }
  func.func @transform_4(%arg0: i32, %arg1: i32) -> (i32, i32) {
    %c0_i32 = arith.constant 0 : i32
    %c0_i32_0 = arith.constant 0 : i32
    return %c0_i32, %arg1 : i32, i32
  }
  func.func @transform_5(%arg0: i32, %arg1: i32) -> (i32, i32) {
    %c0_i32 = arith.constant 0 : i32
    return %arg0, %arg1 : i32, i32
  }
  func.func @transform_6(%arg0: i32, %arg1: i32) -> (i32, i32) {
    %c0_i32 = arith.constant 0 : i32
    %c0_i32_0 = arith.constant 0 : i32
    return %arg0, %c0_i32 : i32, i32
  }
}

</mosaic_0001>

<bundles_post_ra>
// kernel: squeeze.3
= control target key start
LH: loop header
LB: loop body
LE: loop exit
PB: predicated region body
PF: predicated region fallthrough
CT: control target
= control target key end

     0   :  { %s80_s0 = inlined_call_operand.vmem [shape: s32[16], index: 0, kind: input, shape index: {}]   ;;  %s81_s1 = inlined_call_operand.hbm [shape: s32[2,8], index: 1, kind: output, shape index: {}]  }
   0x1   :  { %v5_v0 = vld [vmem:[%s80_s0] sm:$0x1] }
   0x2   :  { %2 = vsyncpa [#allocation1], 0  ;;  %6 = vst [vmem:[#allocation3] sm:$0x1] %v5_v0  ;;  %vm8_vm0 = vcmask 64512   ;;  %s62_s0 = smov 120  }
   0x3   :  { %s63_s8 = smov [#allocation0]   ;;  %s27_s1 = sshll.u32 %s81_s1, 4  ;;  %s28_s1 = int_to_ptr.hbm [resolvable:$true] %s27_s1 }
   0x4   :  { %s25_s9 = sshll.u32 %s63_s8, 4  ;;  %s26_s9 = int_to_ptr.vmem [resolvable:$true] %s25_s9 }
   0x9   :  { %v10_v1 = vld [vmem:[#allocation3] sm:$0x1]  }
   0xa   :  { %v7_v2 = vld [vmem:[#allocation3] sm:$0x1]   ;;  %11 = vrot.lane.b32.xlu0 %v10_v1, %s62_s0 }
   0xb   :  { %9 = vst.msk [vmem:[#allocation2] sm:$0x1] %vm8_vm0, %v7_v2  }
  0x7c   :  { %v12_v3 = vpop.permute.xlu0 %11  }
  0x7d   :  { %15 = vst.msk [vmem:[#allocation2 + $0x1] sm:$0x1] %vm8_vm0, %v12_v3  }
  0x84   :  { %v18_v4 = vld [vmem:[#allocation2] sm:$0x3] }
  0x85   :  { %21 = vst [vmem:[#allocation0] sm:$0x3] %v18_v4 }
  0x86   :  { %30 = dma.vmem_to_hbm [thread:$0]  %s26_s9, 32, %s28_s1, [#allocation1]  }
  0x87   :  { %60 = dma.done.wait [#allocation1], 32  }
  0x88   :  { %61 = vsyncadd [#allocation1], 4294967264 }
  0x89   :  { %33 = vsyncpa [#allocation1], 1 }

// kernel: squeeze.2
= control target key start
LH: loop header
LB: loop body
LE: loop exit
PB: predicated region body
PF: predicated region fallthrough
CT: control target
= control target key end

     0   :  { %s80_s0 = inlined_call_operand.vmem [shape: f32[16], index: 0, kind: input, shape index: {}]   ;;  %s81_s1 = inlined_call_operand.hbm [shape: f32[2,8], index: 1, kind: output, shape index: {}]  }
   0x1   :  { %v5_v0 = vld [vmem:[%s80_s0] sm:$0x1] }
   0x2   :  { %2 = vsyncpa [#allocation1], 0  ;;  %6 = vst [vmem:[#allocation3] sm:$0x1] %v5_v0  ;;  %vm8_vm0 = vcmask 64512   ;;  %s62_s0 = smov 120  }
   0x3   :  { %s63_s8 = smov [#allocation0]   ;;  %s27_s1 = sshll.u32 %s81_s1, 4  ;;  %s28_s1 = int_to_ptr.hbm [resolvable:$true] %s27_s1 }
   0x4   :  { %s25_s9 = sshll.u32 %s63_s8, 4  ;;  %s26_s9 = int_to_ptr.vmem [resolvable:$true] %s25_s9 }
   0x9   :  { %v10_v1 = vld [vmem:[#allocation3] sm:$0x1]  }
   0xa   :  { %v7_v2 = vld [vmem:[#allocation3] sm:$0x1]   ;;  %11 = vrot.lane.b32.xlu0 %v10_v1, %s62_s0 }
   0xb   :  { %9 = vst.msk [vmem:[#allocation2] sm:$0x1] %vm8_vm0, %v7_v2  }
  0x7c   :  { %v12_v3 = vpop.permute.xlu0 %11  }
  0x7d   :  { %15 = vst.msk [vmem:[#allocation2 + $0x1] sm:$0x1] %vm8_vm0, %v12_v3  }
  0x84   :  { %v18_v4 = vld [vmem:[#allocation2] sm:$0x3] }
  0x85   :  { %21 = vst [vmem:[#allocation0] sm:$0x3] %v18_v4 }
  0x86   :  { %30 = dma.vmem_to_hbm [thread:$0]  %s26_s9, 32, %s28_s1, [#allocation1]  }
  0x87   :  { %60 = dma.done.wait [#allocation1], 32  }
  0x88   :  { %61 = vsyncadd [#allocation1], 4294967264 }
  0x89   :  { %33 = vsyncpa [#allocation1], 1 }

// kernel: _heads.1
= control target key start
LH: loop header
LB: loop body
LE: loop exit
PB: predicated region body
PF: predicated region fallthrough
CT: control target
= control target key end

     0   :  { %vm54_vm0 = vcmask 261120   ;;  %vm76_vm1 = vcmask 257024   ;;  %vm79_vm2 = vcmask 7168   ;;  %v300_v25 = vmov -inf   ;;  %s411_s1 = inlined_call_operand.vmem [shape: bf16[32,32], index: 1, kind: input, shape index: {}]   ;;  %s412_s2 = inlined_call_operand.vmem [shape: f32[1,32], index: 2, kind: input, shape index: {}]   ;;  %s413_s0 = inlined_call_operand.vmem [shape: bf16[16,32], index: 0, kind: input, shape index: {}]   ;;  %s414_s3 = inlined_call_operand.vmem [shape: bf16[32,256], index: 3, kind: input, shape index: {}]   ;;  %s415_s4 = inlined_call_operand.vmem [shape: f32[1,256], index: 4, kind: input, shape index: {}]   ;;  %s416_s5 = inlined_call_operand.vmem [shape: f32[16,256], index: 5, kind: output, shape index: {0}]   ;;  %s417_s6 = inlined_call_operand.vmem [shape: s32[16,1], index: 6, kind: output, shape index: {1}]  }
   0x1   :  { %v287_v0 = vld [vmem:[%s411_s1 + $0x8] sm:$0xff]  ;;  %v286_v1 = vld [vmem:[%s411_s1] sm:$0xff]  ;;  %v275_v3 = vld [vmem:[%s414_s3 + $0x10] sm:$0xf]  ;;  %80 = vst.msk [vmem:[#allocation3] sm:$0xff] %vm79_vm2, %v300_v25  ;;  %v158_v37 = vlaneseq  ;;  %v301_v56 = vmov 0  }
   0x2   :  { %64 = vmatpush.bf16.msra.mxu0 %v287_v0  ;;  %v285_v2 = vld [vmem:[%s413_s0] sm:$0xff]  ;;  %v292_v4 = vld [vmem:[%s414_s3 + $0x14] sm:$0xf0]  ;;  %v291_v5 = vld [vmem:[%s414_s3 + $0x14] sm:$0xf]  ;;  %81 = vst.msk [vmem:[#allocation3 + $0x8] sm:$0xff] %vm79_vm2, %v300_v25 }
   0x3   :  { %v276_v6 = vor.u32 %v292_v4, %v275_v3  ;;  %v277_v7 = vld [vmem:[%s414_s3 + $0x18] sm:$0xf0]  ;;  %v267_v8 = vld [vmem:[%s414_s3] sm:$0xf]  ;;  %v290_v9 = vld [vmem:[%s414_s3 + $0x4] sm:$0xf0] }
   0x4   :  { %v280_v10 = vor.u32 %v291_v5, %v277_v7  ;;  %v289_v11 = vld [vmem:[%s414_s3 + $0x4] sm:$0xf]  ;;  %v269_v12 = vld [vmem:[%s414_s3 + $0x8] sm:$0xf0]  ;;  %v268_v13 = vor.u32 %v290_v9, %v267_v8  ;;  %v295_v15 = vld [vmem:[%s412_s2] ss:$0 sm:$0xff] }
   0x5   :  { %131 = vmatpush.bf16.msra.mxu1 %v276_v6  ;;  %v272_v14 = vor.u32 %v289_v11, %v269_v12  ;;  %v90_v26 = vld [vmem:[%s415_s4] sm:$0x3]  ;;  %v159_v38 = vand.u32 127, %v158_v37  ;;  %82 = vst.msk [vmem:[#allocation4] sm:$0xff] %vm79_vm2, %v301_v56 }
   0x6   :  { %65 = vmatpush.bf16.msra.mxu0 %v286_v1  ;;  %145 = vmatpush.bf16.msra.mxu2 %v280_v10  ;;  %v92_v27 = vperm.slane %v90_v26, 0  ;;  %v93_v30 = vperm.slane %v90_v26, 1  ;;  %83 = vst.msk [vmem:[#allocation4 + $0x8] sm:$0xff] %vm79_vm2, %v301_v56 }
   0x7   :  { %v160_v40 = vadd.s32 128, %v159_v38 }
   0x8   :  { %v216_v39 = vld [vmem:[#allocation3] sm:$0xff] }
   0x9   :  { %260 = vmatmul.msk.bf16.vlgmr.msra.gmra.mxu0 %vm54_vm0, %v285_v2  ;;  %132 = vmatpush.bf16.msra.mxu1 %v268_v13  ;;  %v217_v47 = vld [vmem:[#allocation3 + $0x8] sm:$0xff] }
   0xa   :  { %146 = vmatpush.bf16.msra.mxu2 %v272_v14 }
   0xc   :  { %v220_v5 = vld [vmem:[#allocation4] sm:$0xff] }
   0xd   :  { %v221_v12 = vld [vmem:[#allocation4 + $0x8] sm:$0xff] }
  0x86   :  { %v67_v16 = vpop.f32.mrf.mxu0 }
  0x87   :  { %v68_v17 = vadd.f32 %v295_v15, %v67_v16 }
  0x89   :  { %296 = vtanh.f32 %v68_v17 }
  0x8e   :  { %v69_v18 = vpop.f32.mrf.mxu0 }
  0x8f   :  { %v297_v19 = vpop.eup %296  ;;  %v70_v20 = vadd.f32 %v295_v15, %v69_v18 }
  0x90   :  { %v74_v21 = vpack.c.bf16 %v297_v19, %v297_v19 }
  0x91   :  { %298 = vtanh.f32 %v70_v20 }
  0x92   :  { %77 = vst.msk [vmem:[#allocation2] sm:$0xf] %vm76_vm1, %v74_v21 }
  0x97   :  { %v299_v22 = vpop.eup %298 }
  0x98   :  { %v75_v23 = vpack.c.bf16 %v299_v22, %v299_v22 }
  0x9a   :  { %78 = vst.msk [vmem:[#allocation2 + $0x4] sm:$0xf] %vm76_vm1, %v75_v23 }
  0xa1   :  { %v288_v24 = vld [vmem:[#allocation2] sm:$0xff] }
  0xa2   :  { %281 = vmatmul.msk.bf16.vlgmr.msra.gmra.mxu1 %vm54_vm0, %v288_v24  ;;  %282 = vmatmul.msk.bf16.vlgmr.msra.gmra.mxu2 %vm54_vm0, %v288_v24 }
 0x11f   :  { %v134_v28 = vpop.f32.mrf.mxu1 }
 0x120   :  { %v135_v29 = vadd.f32 %v134_v28, %v92_v27 }
 0x122   :  { %153 = vst [vmem:[%s416_s5] sm:$0xff] %v135_v29  ;;  %171 = vmax.xlane.f32.xlu0 %v135_v29 }
 0x125   :  { %v148_v31 = vpop.f32.mrf.mxu2 }
 0x126   :  { %v149_v32 = vadd.f32 %v148_v31, %v93_v30 }
 0x127   :  { %v136_v33 = vpop.f32.mrf.mxu1 }
 0x128   :  { %154 = vst [vmem:[%s416_s5 + $0x8] sm:$0xff] %v149_v32  ;;  %v137_v34 = vadd.f32 %v136_v33, %v92_v27 }
 0x12a   :  { %155 = vst [vmem:[%s416_s5 + $0x10] sm:$0xff] %v137_v34  ;;  %174 = vmax.xlane.f32.xlu0 %v137_v34 }
 0x12d   :  { %v150_v35 = vpop.f32.mrf.mxu2 }
 0x12e   :  { %v151_v36 = vadd.f32 %v150_v35, %v93_v30 }
 0x130   :  { %156 = vst [vmem:[%s416_s5 + $0x18] sm:$0xff] %v151_v36 }
 0x195   :  { %v172_v41 = vpop.xlane.xlu0 %171 }
 0x196   :  { %vm176_vm3 = vcmp.eq.f32.partialorder %v135_v29, %v172_v41  ;;  %vm283_vm4 = vcmp.eq.f32.partialorder %v172_v41, -inf  ;;  %vm218_vm5 = vcmp.gt.f32.partialorder %v172_v41, %v216_v39 }
 0x197   :  { %v229_v42 = vsel %vm218_vm5, %v172_v41, %v216_v39  ;;  %v180_v43 = vsel %vm176_vm3, %v159_v38, 1073741824  ;;  %v181_v44 = vsel %vm283_vm4, %v160_v40, 1073741824 }
 0x198   :  { %231 = vst.msk [vmem:[#allocation3] sm:$0xff] %vm79_vm2, %v229_v42  ;;  %vm184_vm6 = vcmp.lt.s32.totalorder %v180_v43, %v181_v44 }
 0x199   :  { %v185_v45 = vsel %vm184_vm6, %v180_v43, %v181_v44 }
 0x19a   :  { %v187_v46 = vshra.s32 %v185_v45, 16  ;;  %v186_v57 = vand.u32 65535, %v185_v45 }
 0x19c   :  { %v189_v48 = vcvt.s32.f32 %v187_v46  ;;  %v188_v59 = vcvt.s32.f32 %v186_v57 }
 0x19d   :  { %v175_v49 = vpop.xlane.xlu0 %174 }
 0x19e   :  { %vm178_vm7 = vcmp.eq.f32.partialorder %v137_v34, %v175_v49  ;;  %vm284_vm8 = vcmp.eq.f32.partialorder %v175_v49, -inf  ;;  %vm219_vm9 = vcmp.gt.f32.partialorder %v175_v49, %v217_v47  ;;  %190 = vmin.xlane.f32.xlu1 %v189_v48 }
 0x19f   :  { %v182_v50 = vsel %vm178_vm7, %v159_v38, 1073741824  ;;  %v183_v51 = vsel %vm284_vm8, %v160_v40, 1073741824  ;;  %v230_v52 = vsel %vm219_vm9, %v175_v49, %v217_v47 }
 0x1a0   :  { %232 = vst.msk [vmem:[#allocation3 + $0x8] sm:$0xff] %vm79_vm2, %v230_v52  ;;  %vm200_vm10 = vcmp.lt.s32.totalorder %v182_v50, %v183_v51 }
 0x1a1   :  { %v201_v53 = vsel %vm200_vm10, %v182_v50, %v183_v51 }
 0x1a2   :  { %v203_v54 = vshra.s32 %v201_v53, 16  ;;  %v202_v61 = vand.u32 65535, %v201_v53 }
 0x1a4   :  { %v205_v55 = vcvt.s32.f32 %v203_v54  ;;  %v204_v63 = vcvt.s32.f32 %v202_v61 }
 0x1a6   :  { %206 = vmin.xlane.f32.xlu1 %v205_v55 }
 0x211   :  { %v191_v58 = vpop.xlane.xlu1 %190 }
 0x212   :  { %vm192_vm11 = vcmp.eq.f32.partialorder %v189_v48, %v191_v58  ;;  %v197_v1 = vcvt.f32.s32 %v191_v58 }
 0x213   :  { %v193_v60 = vsel %vm192_vm11, %v188_v59, inf }
 0x214   :  { %194 = vmin.xlane.f32.xlu2 %v193_v60  ;;  %v198_v3 = vshll.u32 %v197_v1, 16 }
 0x219   :  { %v207_v62 = vpop.xlane.xlu1 %206 }
 0x21a   :  { %vm208_vm12 = vcmp.eq.f32.partialorder %v205_v55, %v207_v62  ;;  %v213_v7 = vcvt.f32.s32 %v207_v62 }
 0x21b   :  { %v209_v0 = vsel %vm208_vm12, %v204_v63, inf }
 0x21c   :  { %210 = vmin.xlane.f32.xlu2 %v209_v0  ;;  %v214_v10 = vshll.u32 %v213_v7, 16 }
 0x287   :  { %v195_v2 = vpop.xlane.xlu2 %194 }
 0x288   :  { %v196_v4 = vcvt.f32.s32 %v195_v2 }
 0x28a   :  { %v199_v6 = vadd.s32 %v198_v3, %v196_v4 }
 0x28c   :  { %v222_v8 = vsel %vm218_vm5, %v199_v6, %v220_v5 }
 0x28d   :  { %225 = vst.msk [vmem:[#allocation4] sm:$0xff] %vm79_vm2, %v222_v8 }
 0x28f   :  { %v211_v9 = vpop.xlane.xlu2 %210 }
 0x290   :  { %v212_v11 = vcvt.f32.s32 %v211_v9 }
 0x292   :  { %v215_v13 = vadd.s32 %v214_v10, %v212_v11 }
 0x294   :  { %v236_v14 = vld [vmem:[#allocation4] sm:$0xff]  ;;  %v223_v15 = vsel %vm219_vm9, %v215_v13, %v221_v12 }
 0x295   :  { %238 = vst.msk [vmem:[%s417_s6] sm:$0xff] %vm79_vm2, %v236_v14 }
 0x296   :  { %226 = vst.msk [vmem:[#allocation4 + $0x8] sm:$0xff] %vm79_vm2, %v223_v15 }
 0x29d   :  { %v237_v16 = vld [vmem:[#allocation4 + $0x8] sm:$0xff] }
 0x29e   :  { %239 = vst.msk [vmem:[%s417_s6 + $0x8] sm:$0xff] %vm79_vm2, %v237_v16 }

</bundles_post_ra>
